<compile_context>
chip_gen: v7x
topology: tpu7x:2x2x1
jax: 0.10.0
libtpu: 0.0.40
codegen_flags: <defaults>
</compile_context>

<pallas_src>
import functools

import jax
import jax.numpy as jnp
from jax.experimental import pallas as pl
from jax.experimental.pallas import tpu as pltpu

_CP = 128  # lane-dense channel padding (one vreg lane width)


def _round_up(n, m):
    return (n + m - 1) // m * m


def _tcn_stack_kernel(x_ref, w1_ref, b1_ref, w2_ref, b2_ref, wd_ref, bd_ref,
                      out_ref, xpad_ref, *, ksize, dilations, has_downsample,
                      c_in, c_last, bb, tp, cp):
    """Full TCN stack for BB packed batch elements.

    x_ref  : (BB, TP, C_in)      f32, narrow input block
    w1_ref : (L, K*CP, CP)       bf16, conv1 taps flattened (tap-major)
    w2_ref : (L, K*CP, CP)       bf16, conv2 taps flattened
    wd_ref : (L, CP, CP)         bf16, 1x1 downsample (unused where identity)
    b*_ref : (L, 1, CP)          f32 biases
    out_ref: (BB, TP, C_last)    bf16, narrow output block
    xpad_ref: (BB*TP, CP)        f32 VMEM scratch (in-kernel lane padding)
    """
    m = bb * tp

    # ---- in-kernel lane padding of the narrow input (no host repack pass) ----
    xpad_ref[...] = jnp.zeros_like(xpad_ref)
    xpad_ref[:, :c_in] = x_ref[...].reshape(m, c_in)
    x = xpad_ref[...]                                          # (M, CP) f32

    # ---- hoisted causal-mask machinery: one iota + one compare per shift ----
    row = jax.lax.broadcasted_iota(jnp.int32, (m, 1), 0)
    t_idx = row if bb == 1 else jax.lax.rem(row, tp)           # within-batch time
    shift_set = sorted({(ksize - 1 - k) * d
                        for d in dilations for k in range(ksize)} - {0})
    masks = {s: t_idx >= s for s in shift_set}                 # reused everywhere

    def causal_taps(a_f32, a_bf16, dil):
        """im2col-lite LHS for a causal dilated conv: (M, K*CP) bf16.

        Tap k is the input delayed by (K-1-k)*dil samples.  The roll wraps
        across the block (and across packed batch elements), but every wrapped
        row has within-batch t < shift and is zeroed by the hoisted mask.
        """
        cols = []
        for k in range(ksize):
            s = (ksize - 1 - k) * dil
            if s == 0:
                cols.append(a_bf16)
            else:
                rolled = pltpu.roll(a_f32, shift=s, axis=0)    # XLU, f32 (safe on v5e)
                cols.append(jnp.where(masks[s], rolled,
                                      jnp.zeros_like(rolled)).astype(jnp.bfloat16))
        return cols[0] if len(cols) == 1 else jnp.concatenate(cols, axis=-1)

    for i, dil in enumerate(dilations):                        # static unroll (small L)
        xb = x.astype(jnp.bfloat16)
        # ---- conv1 (causal, dilated): K taps merged into one MXU dot ----
        lhs1 = causal_taps(x, xb, dil)                         # (M, K*CP) bf16
        h = jnp.dot(lhs1, w1_ref[i],
                    preferred_element_type=jnp.float32) + b1_ref[i]
        h = jnp.maximum(h, 0.0)
        # ---- conv2 (causal, dilated) ----
        lhs2 = causal_taps(h, h.astype(jnp.bfloat16), dil)
        o = jnp.dot(lhs2, w2_ref[i],
                    preferred_element_type=jnp.float32) + b2_ref[i]
        # ---- residual (1x1 downsample conv, or exact f32 identity) ----
        if has_downsample[i]:
            res = jnp.dot(xb, wd_ref[i],
                          preferred_element_type=jnp.float32) + bd_ref[i]
        else:
            res = x
        x = jnp.maximum(o + res, 0.0)

    # narrow bf16 store: only the true output channels hit HBM
    out_ref[...] = x[:, :c_last].astype(out_ref.dtype).reshape(bb, tp, c_last)


def _prep_params(params, ksize, cp):
    """Zero-pad all channel dims to cp, flatten conv taps, cast to bf16, stack."""
    W1, B1, W2, B2, WD, BD, has_ds = [], [], [], [], [], [], []
    for p in params:
        _, c_in, c_out = p["w1"].shape
        w1 = jnp.zeros((ksize, cp, cp), jnp.float32).at[:, :c_in, :c_out].set(p["w1"])
        W1.append(w1.reshape(ksize * cp, cp).astype(jnp.bfloat16))
        B1.append(jnp.zeros((1, cp), jnp.float32).at[:, :c_out].set(p["b1"]))
        w2 = jnp.zeros((ksize, cp, cp), jnp.float32).at[:, :c_out, :c_out].set(p["w2"])
        W2.append(w2.reshape(ksize * cp, cp).astype(jnp.bfloat16))
        B2.append(jnp.zeros((1, cp), jnp.float32).at[:, :c_out].set(p["b2"]))
        ds = p.get("wd") is not None
        has_ds.append(ds)
        wd = jnp.zeros((cp, cp), jnp.float32)
        bd = jnp.zeros((1, cp), jnp.float32)
        if ds:
            wd = wd.at[:c_in, :c_out].set(p["wd"])
            bd = bd.at[:, :c_out].set(p["bd"])
        WD.append(wd.astype(jnp.bfloat16))
        BD.append(bd)
    return (jnp.stack(W1), jnp.stack(B1), jnp.stack(W2), jnp.stack(B2),
            jnp.stack(WD), jnp.stack(BD), tuple(has_ds))


def tcn_wrapper_forward(x, params, *, ksize):
    """TCNWrapper.forward: x (B, T, C_in) -> (B, T, C_last).

    The PyTorch wrapper's transpose(-1, -2) pair is absorbed by working in NLC.
    The entire TemporalBlock stack runs in one pallas_call.
    """
    B, T, c_in = x.shape
    L = len(params)
    c_last = params[-1]["w1"].shape[2]
    cp = _CP
    tp = _round_up(T, 8)

    # Batch packing: fill the MXU M dimension when T is short, while keeping at
    # least 2 "parallel" grid steps so both v7x TensorCores stay busy.
    bb = 1
    while (B % (bb * 2) == 0) and (B // (bb * 2) >= 2) and (bb * tp < 256):
        bb *= 2

    # Only a narrow time-pad (if T is not a sublane multiple); no 128-wide repack.
    xp = x if tp == T else jnp.zeros((B, tp, c_in), x.dtype).at[:, :T, :].set(x)
    W1, B1, W2, B2, WD, BD, has_ds = _prep_params(params, ksize, cp)
    dilations = tuple(2 ** i for i in range(L))
    kcp = ksize * cp

    # VMEM budget estimate (weights x2 buffers, activations, im2col temp, I/O blocks).
    weight_bytes = sum(int(a.size) * a.dtype.itemsize
                       for a in (W1, B1, W2, B2, WD, BD))
    act_bytes = bb * tp * cp * 4
    lhs_bytes = bb * tp * kcp * 2
    io_bytes = 2 * (bb * tp * c_in * 4 + bb * tp * c_last * 2)
    need = 2 * weight_bytes + 4 * act_bytes + 2 * lhs_bytes + io_bytes
    vmem_limit = int(min(max(2 * need, 32 * 1024 * 1024), 64 * 1024 * 1024))

    kernel = functools.partial(
        _tcn_stack_kernel, ksize=ksize, dilations=dilations,
        has_downsample=has_ds, c_in=c_in, c_last=c_last, bb=bb, tp=tp, cp=cp)

    out = pl.pallas_call(
        kernel,
        out_shape=jax.ShapeDtypeStruct((B, tp, c_last), jnp.bfloat16),
        grid_spec=pltpu.PrefetchScalarGridSpec(
            num_scalar_prefetch=0,
            grid=(B // bb,),
            in_specs=[
                pl.BlockSpec((bb, tp, c_in), lambda b: (b, 0, 0)),
                pl.BlockSpec((L, kcp, cp), lambda b: (0, 0, 0)),
                pl.BlockSpec((L, 1, cp), lambda b: (0, 0, 0)),
                pl.BlockSpec((L, kcp, cp), lambda b: (0, 0, 0)),
                pl.BlockSpec((L, 1, cp), lambda b: (0, 0, 0)),
                pl.BlockSpec((L, cp, cp), lambda b: (0, 0, 0)),
                pl.BlockSpec((L, 1, cp), lambda b: (0, 0, 0)),
            ],
            out_specs=pl.BlockSpec((bb, tp, c_last), lambda b: (b, 0, 0)),
            scratch_shapes=[pltpu.VMEM((bb * tp, cp), jnp.float32)],
        ),
        compiler_params=pltpu.CompilerParams(
            dimension_semantics=("parallel",),
            vmem_limit_bytes=vmem_limit),
    )(xp, W1, B1, W2, B2, WD, BD)

    out = out if tp == T else out[:, :T, :]
    return out.astype(x.dtype)


# ------------------------- pure-JAX reference (for check) -------------------
# Mirrors the kernel numerics: bf16 matmul operands, f32 accumulation, exact
# f32 identity residual where PyTorch has no downsample conv.
def _ref_block(x, p, *, ksize, dilation):
    B, T, _ = x.shape
    pad = (ksize - 1) * dilation
    xb = x.astype(jnp.bfloat16)
    xp = jnp.pad(xb, ((0, 0), (pad, 0), (0, 0)))
    acc1 = sum(jnp.einsum("btc,cd->btd",
                          xp[:, k * dilation:k * dilation + T, :],
                          p["w1"][k].astype(jnp.bfloat16),
                          preferred_element_type=jnp.float32)
               for k in range(ksize))
    h = jnp.maximum(acc1 + p["b1"], 0.0)
    hp = jnp.pad(h.astype(jnp.bfloat16), ((0, 0), (pad, 0), (0, 0)))
    acc2 = sum(jnp.einsum("btc,cd->btd",
                          hp[:, k * dilation:k * dilation + T, :],
                          p["w2"][k].astype(jnp.bfloat16),
                          preferred_element_type=jnp.float32)
               for k in range(ksize))
    out2 = acc2 + p["b2"]
    if p["wd"] is None:
        res = x
    else:
        res = jnp.einsum("btc,cd->btd", xb, p["wd"].astype(jnp.bfloat16),
                         preferred_element_type=jnp.float32) + p["bd"]
    return jnp.maximum(out2 + res, 0.0)


def tcn_reference(x, params, *, ksize):
    for i, p in enumerate(params):
        x = _ref_block(x, p, ksize=ksize, dilation=2 ** i)
    return x


# ----------------------------------- main ------------------------------------
if __name__ == "__main__":
    # TemporalConvNet(num_inputs=4, num_channels=[8, 8], kernel_size=2, dropout=0.2)
    B, T = 2, 16
    num_inputs = 4
    num_channels = [8, 8]
    ksize = 2

    key = jax.random.PRNGKey(0)
    keys = jax.random.split(key, 1 + 6 * len(num_channels))
    x = jax.random.normal(keys[0], (B, T, num_inputs), jnp.float32)

    params = []
    kidx = 1
    c_in = num_inputs
    for c_out in num_channels:
        # conv weights init ~ N(0, 0.01) like the original TCN implementation;
        # weight_norm is folded into these effective weights (equivalent at init).
        w1 = 0.01 * jax.random.normal(keys[kidx], (ksize, c_in, c_out), jnp.float32); kidx += 1
        b1 = 0.01 * jax.random.normal(keys[kidx], (1, c_out), jnp.float32); kidx += 1
        w2 = 0.01 * jax.random.normal(keys[kidx], (ksize, c_out, c_out), jnp.float32); kidx += 1
        b2 = 0.01 * jax.random.normal(keys[kidx], (1, c_out), jnp.float32); kidx += 1
        if c_in == c_out:
            wd, bd = None, None   # PyTorch: no downsample -> exact identity residual
        else:
            wd = 0.01 * jax.random.normal(keys[kidx], (c_in, c_out), jnp.float32)
            bd = 0.01 * jax.random.normal(keys[kidx + 1], (1, c_out), jnp.float32)
        kidx += 2
        params.append(dict(w1=w1, b1=b1, w2=w2, b2=b2, wd=wd, bd=bd))
        c_in = c_out

    out = tcn_wrapper_forward(x, params, ksize=ksize)
    out = jax.block_until_ready(out)

    ref = tcn_reference(x, params, ksize=ksize)
    assert out.shape == (B, T, num_channels[-1])
    # kernel output goes through a final bf16 store -> compare at bf16 tolerance
    assert jnp.allclose(out, ref, atol=2e-3, rtol=2e-2), "kernel/reference mismatch"

    print("KERNEL_OK")
</pallas_src>

<mosaic_0001>
module attributes {stable_mosaic.version = 11 : i64} {
  func.func @_tcn_stack_kernel(%arg0: i32, %arg1: memref<1x16x4xf32, #tpu.memory_space<vmem>>, %arg2: memref<2x256x128xbf16, #tpu.memory_space<vmem>>, %arg3: memref<2x1x128xf32, #tpu.memory_space<vmem>>, %arg4: memref<2x256x128xbf16, #tpu.memory_space<vmem>>, %arg5: memref<2x1x128xf32, #tpu.memory_space<vmem>>, %arg6: memref<2x128x128xbf16, #tpu.memory_space<vmem>>, %arg7: memref<2x1x128xf32, #tpu.memory_space<vmem>>, %arg8: memref<1x16x8xbf16, #tpu.memory_space<vmem>>, %arg9: memref<16x128xf32, #tpu.memory_space<vmem>>) attributes {dimension_semantics = [#tpu.dimension_semantics<parallel>], iteration_bounds = array<i64: 2>, scalar_prefetch = 0 : i64, scratch_operands = 1 : i64, tpu.core_type = #tpu.core_type<tc>, window_params = [{transform_indices = @transform_0, window_bounds = array<i64: 1, 16, 4>}, {pipeline_mode = #tpu.pipeline_mode<synchronous>, transform_indices = @transform_1, window_bounds = array<i64: 2, 256, 128>}, {pipeline_mode = #tpu.pipeline_mode<synchronous>, transform_indices = @transform_2, window_bounds = array<i64: 2, 1, 128>}, {pipeline_mode = #tpu.pipeline_mode<synchronous>, transform_indices = @transform_3, window_bounds = array<i64: 2, 256, 128>}, {pipeline_mode = #tpu.pipeline_mode<synchronous>, transform_indices = @transform_4, window_bounds = array<i64: 2, 1, 128>}, {pipeline_mode = #tpu.pipeline_mode<synchronous>, transform_indices = @transform_5, window_bounds = array<i64: 2, 128, 128>}, {pipeline_mode = #tpu.pipeline_mode<synchronous>, transform_indices = @transform_6, window_bounds = array<i64: 2, 1, 128>}, {transform_indices = @transform_7, window_bounds = array<i64: 1, 16, 8>}]} {
    %cst = arith.constant 0.000000e+00 : f32
    %0 = vector.broadcast %cst : f32 to vector<16x128xf32>
    %c0 = arith.constant 0 : index
    %c0_0 = arith.constant 0 : index
    %1 = vector.load %arg9[%c0, %c0_0] : memref<16x128xf32, #tpu.memory_space<vmem>>, vector<16x128xf32>
    tpu.vector_store %arg9[%c0, %c0_0], %0 {strides = array<i32>} : memref<16x128xf32, #tpu.memory_space<vmem>>, vector<16x128xf32>,
    %c0_1 = arith.constant 0 : index
    %c0_2 = arith.constant 0 : index
    %c0_3 = arith.constant 0 : index
    %2 = vector.load %arg1[%c0_1, %c0_2, %c0_3] : memref<1x16x4xf32, #tpu.memory_space<vmem>>, vector<1x16x4xf32>
    %3 = vector.shape_cast %2 : vector<1x16x4xf32> to vector<16x4xf32>
    %c0_4 = arith.constant 0 : index
    %c0_5 = arith.constant 0 : index
    %4 = vector.load %arg9[%c0_4, %c0_5] : memref<16x128xf32, #tpu.memory_space<vmem>>, vector<16x4xf32>
    tpu.vector_store %arg9[%c0_4, %c0_5], %3 {strides = array<i32>} : memref<16x128xf32, #tpu.memory_space<vmem>>, vector<16x4xf32>,
    %c0_6 = arith.constant 0 : index
    %c0_7 = arith.constant 0 : index
    %5 = vector.load %arg9[%c0_6, %c0_7] : memref<16x128xf32, #tpu.memory_space<vmem>>, vector<16x128xf32>
    %6 = tpu.iota {dimensions = array<i32: 0>} : vector<16x1xi32>
    %c1_i32 = arith.constant 1 : i32
    %7 = vector.broadcast %c1_i32 : i32 to vector<16x1xi32>
    %8 = arith.cmpi sge, %6, %7 : vector<16x1xi32>
    %c2_i32 = arith.constant 2 : i32
    %9 = vector.broadcast %c2_i32 : i32 to vector<16x1xi32>
    %10 = arith.cmpi sge, %6, %9 : vector<16x1xi32>
    %11 = arith.truncf %5 : vector<16x128xf32> to vector<16x128xbf16>
    %c1_i32_8 = arith.constant 1 : i32
    %12 = tpu.dynamic_rotate %5 by %c1_i32_8 dim 0 : vector<16x128xf32>, i32 -> vector<16x128xf32>
    %cst_9 = arith.constant 0.000000e+00 : f32
    %13 = vector.broadcast %cst_9 : f32 to vector<16x128xf32>
    %14 = vector.shape_cast %8 : vector<16x1xi1> to vector<16x1xi1>
    %15 = vector.broadcast %14 : vector<16x1xi1> to vector<16x128xi1>
    %16 = arith.select %15, %12, %13 : vector<16x128xi1>, vector<16x128xf32>
    %17 = arith.truncf %16 : vector<16x128xf32> to vector<16x128xbf16>
    %18 = tpu.concatenate %17, %11 in 1 : vector<16x128xbf16>, vector<16x128xbf16> -> vector<16x256xbf16>
    %c0_10 = arith.constant 0 : index
    %c0_11 = arith.constant 0 : index
    %c0_12 = arith.constant 0 : index
    %19 = vector.load %arg2[%c0_10, %c0_11, %c0_12] : memref<2x256x128xbf16, #tpu.memory_space<vmem>>, vector<1x256x128xbf16>
    %20 = vector.shape_cast %19 : vector<1x256x128xbf16> to vector<256x128xbf16>
    %cst_13 = arith.constant dense<0.000000e+00> : vector<16x128xf32>
    %21 = tpu.matmul %18, %20, %cst_13 {dimension_numbers = #tpu.dot_dimension_numbers<[1], [0], [0], [1], [0, 0, 1, 1], [], []>} : vector<16x256xbf16>, vector<256x128xbf16>, vector<16x128xf32> -> vector<16x128xf32>
    %c0_14 = arith.constant 0 : index
    %c0_15 = arith.constant 0 : index
    %c0_16 = arith.constant 0 : index
    %22 = vector.load %arg3[%c0_14, %c0_15, %c0_16] : memref<2x1x128xf32, #tpu.memory_space<vmem>>, vector<1x1x128xf32>
    %23 = vector.shape_cast %22 : vector<1x1x128xf32> to vector<1x128xf32>
    %24 = vector.broadcast %23 : vector<1x128xf32> to vector<16x128xf32>
    %25 = arith.addf %21, %24 : vector<16x128xf32>
    %cst_17 = arith.constant 0.000000e+00 : f32
    %26 = vector.broadcast %cst_17 : f32 to vector<16x128xf32>
    %27 = arith.maximumf %25, %26 : vector<16x128xf32>
    %28 = arith.truncf %27 : vector<16x128xf32> to vector<16x128xbf16>
    %c1_i32_18 = arith.constant 1 : i32
    %29 = tpu.dynamic_rotate %27 by %c1_i32_18 dim 0 : vector<16x128xf32>, i32 -> vector<16x128xf32>
    %cst_19 = arith.constant 0.000000e+00 : f32
    %30 = vector.broadcast %cst_19 : f32 to vector<16x128xf32>
    %31 = vector.shape_cast %8 : vector<16x1xi1> to vector<16x1xi1>
    %32 = vector.broadcast %31 : vector<16x1xi1> to vector<16x128xi1>
    %33 = arith.select %32, %29, %30 : vector<16x128xi1>, vector<16x128xf32>
    %34 = arith.truncf %33 : vector<16x128xf32> to vector<16x128xbf16>
    %35 = tpu.concatenate %34, %28 in 1 : vector<16x128xbf16>, vector<16x128xbf16> -> vector<16x256xbf16>
    %c0_20 = arith.constant 0 : index
    %c0_21 = arith.constant 0 : index
    %c0_22 = arith.constant 0 : index
    %36 = vector.load %arg4[%c0_20, %c0_21, %c0_22] : memref<2x256x128xbf16, #tpu.memory_space<vmem>>, vector<1x256x128xbf16>
    %37 = vector.shape_cast %36 : vector<1x256x128xbf16> to vector<256x128xbf16>
    %cst_23 = arith.constant dense<0.000000e+00> : vector<16x128xf32>
    %38 = tpu.matmul %35, %37, %cst_23 {dimension_numbers = #tpu.dot_dimension_numbers<[1], [0], [0], [1], [0, 0, 1, 1], [], []>} : vector<16x256xbf16>, vector<256x128xbf16>, vector<16x128xf32> -> vector<16x128xf32>
    %c0_24 = arith.constant 0 : index
    %c0_25 = arith.constant 0 : index
    %c0_26 = arith.constant 0 : index
    %39 = vector.load %arg5[%c0_24, %c0_25, %c0_26] : memref<2x1x128xf32, #tpu.memory_space<vmem>>, vector<1x1x128xf32>
    %40 = vector.shape_cast %39 : vector<1x1x128xf32> to vector<1x128xf32>
    %41 = vector.broadcast %40 : vector<1x128xf32> to vector<16x128xf32>
    %42 = arith.addf %38, %41 : vector<16x128xf32>
    %c0_27 = arith.constant 0 : index
    %c0_28 = arith.constant 0 : index
    %c0_29 = arith.constant 0 : index
    %43 = vector.load %arg6[%c0_27, %c0_28, %c0_29] : memref<2x128x128xbf16, #tpu.memory_space<vmem>>, vector<1x128x128xbf16>
    %44 = vector.shape_cast %43 : vector<1x128x128xbf16> to vector<128x128xbf16>
    %cst_30 = arith.constant dense<0.000000e+00> : vector<16x128xf32>
    %45 = tpu.matmul %11, %44, %cst_30 {dimension_numbers = #tpu.dot_dimension_numbers<[1], [0], [0], [1], [0, 0, 1, 1], [], []>} : vector<16x128xbf16>, vector<128x128xbf16>, vector<16x128xf32> -> vector<16x128xf32>
    %c0_31 = arith.constant 0 : index
    %c0_32 = arith.constant 0 : index
    %c0_33 = arith.constant 0 : index
    %46 = vector.load %arg7[%c0_31, %c0_32, %c0_33] : memref<2x1x128xf32, #tpu.memory_space<vmem>>, vector<1x1x128xf32>
    %47 = vector.shape_cast %46 : vector<1x1x128xf32> to vector<1x128xf32>
    %48 = vector.broadcast %47 : vector<1x128xf32> to vector<16x128xf32>
    %49 = arith.addf %45, %48 : vector<16x128xf32>
    %50 = arith.addf %42, %49 : vector<16x128xf32>
    %cst_34 = arith.constant 0.000000e+00 : f32
    %51 = vector.broadcast %cst_34 : f32 to vector<16x128xf32>
    %52 = arith.maximumf %50, %51 : vector<16x128xf32>
    %53 = arith.truncf %52 : vector<16x128xf32> to vector<16x128xbf16>
    %c2_i32_35 = arith.constant 2 : i32
    %54 = tpu.dynamic_rotate %52 by %c2_i32_35 dim 0 : vector<16x128xf32>, i32 -> vector<16x128xf32>
    %cst_36 = arith.constant 0.000000e+00 : f32
    %55 = vector.broadcast %cst_36 : f32 to vector<16x128xf32>
    %56 = vector.shape_cast %10 : vector<16x1xi1> to vector<16x1xi1>
    %57 = vector.broadcast %56 : vector<16x1xi1> to vector<16x128xi1>
    %58 = arith.select %57, %54, %55 : vector<16x128xi1>, vector<16x128xf32>
    %59 = arith.truncf %58 : vector<16x128xf32> to vector<16x128xbf16>
    %60 = tpu.concatenate %59, %53 in 1 : vector<16x128xbf16>, vector<16x128xbf16> -> vector<16x256xbf16>
    %c1 = arith.constant 1 : index
    %c0_37 = arith.constant 0 : index
    %c0_38 = arith.constant 0 : index
    %61 = vector.load %arg2[%c1, %c0_37, %c0_38] : memref<2x256x128xbf16, #tpu.memory_space<vmem>>, vector<1x256x128xbf16>
    %62 = vector.shape_cast %61 : vector<1x256x128xbf16> to vector<256x128xbf16>
    %cst_39 = arith.constant dense<0.000000e+00> : vector<16x128xf32>
    %63 = tpu.matmul %60, %62, %cst_39 {dimension_numbers = #tpu.dot_dimension_numbers<[1], [0], [0], [1], [0, 0, 1, 1], [], []>} : vector<16x256xbf16>, vector<256x128xbf16>, vector<16x128xf32> -> vector<16x128xf32>
    %c1_40 = arith.constant 1 : index
    %c0_41 = arith.constant 0 : index
    %c0_42 = arith.constant 0 : index
    %64 = vector.load %arg3[%c1_40, %c0_41, %c0_42] : memref<2x1x128xf32, #tpu.memory_space<vmem>>, vector<1x1x128xf32>
    %65 = vector.shape_cast %64 : vector<1x1x128xf32> to vector<1x128xf32>
    %66 = vector.broadcast %65 : vector<1x128xf32> to vector<16x128xf32>
    %67 = arith.addf %63, %66 : vector<16x128xf32>
    %cst_43 = arith.constant 0.000000e+00 : f32
    %68 = vector.broadcast %cst_43 : f32 to vector<16x128xf32>
    %69 = arith.maximumf %67, %68 : vector<16x128xf32>
    %70 = arith.truncf %69 : vector<16x128xf32> to vector<16x128xbf16>
    %c2_i32_44 = arith.constant 2 : i32
    %71 = tpu.dynamic_rotate %69 by %c2_i32_44 dim 0 : vector<16x128xf32>, i32 -> vector<16x128xf32>
    %cst_45 = arith.constant 0.000000e+00 : f32
    %72 = vector.broadcast %cst_45 : f32 to vector<16x128xf32>
    %73 = vector.shape_cast %10 : vector<16x1xi1> to vector<16x1xi1>
    %74 = vector.broadcast %73 : vector<16x1xi1> to vector<16x128xi1>
    %75 = arith.select %74, %71, %72 : vector<16x128xi1>, vector<16x128xf32>
    %76 = arith.truncf %75 : vector<16x128xf32> to vector<16x128xbf16>
    %77 = tpu.concatenate %76, %70 in 1 : vector<16x128xbf16>, vector<16x128xbf16> -> vector<16x256xbf16>
    %c1_46 = arith.constant 1 : index
    %c0_47 = arith.constant 0 : index
    %c0_48 = arith.constant 0 : index
    %78 = vector.load %arg4[%c1_46, %c0_47, %c0_48] : memref<2x256x128xbf16, #tpu.memory_space<vmem>>, vector<1x256x128xbf16>
    %79 = vector.shape_cast %78 : vector<1x256x128xbf16> to vector<256x128xbf16>
    %cst_49 = arith.constant dense<0.000000e+00> : vector<16x128xf32>
    %80 = tpu.matmul %77, %79, %cst_49 {dimension_numbers = #tpu.dot_dimension_numbers<[1], [0], [0], [1], [0, 0, 1, 1], [], []>} : vector<16x256xbf16>, vector<256x128xbf16>, vector<16x128xf32> -> vector<16x128xf32>
    %c1_50 = arith.constant 1 : index
    %c0_51 = arith.constant 0 : index
    %c0_52 = arith.constant 0 : index
    %81 = vector.load %arg5[%c1_50, %c0_51, %c0_52] : memref<2x1x128xf32, #tpu.memory_space<vmem>>, vector<1x1x128xf32>
    %82 = vector.shape_cast %81 : vector<1x1x128xf32> to vector<1x128xf32>
    %83 = vector.broadcast %82 : vector<1x128xf32> to vector<16x128xf32>
    %84 = arith.addf %80, %83 : vector<16x128xf32>
    %85 = arith.addf %84, %52 : vector<16x128xf32>
    %cst_53 = arith.constant 0.000000e+00 : f32
    %86 = vector.broadcast %cst_53 : f32 to vector<16x128xf32>
    %87 = arith.maximumf %85, %86 : vector<16x128xf32>
    %88 = vector.extract_strided_slice %87 {offsets = [0, 0], sizes = [16, 8], strides = [1, 1]} : vector<16x128xf32> to vector<16x8xf32>
    %89 = arith.truncf %88 : vector<16x8xf32> to vector<16x8xbf16>
    %90 = vector.shape_cast %89 : vector<16x8xbf16> to vector<1x16x8xbf16>
    %c0_54 = arith.constant 0 : index
    %c0_55 = arith.constant 0 : index
    %c0_56 = arith.constant 0 : index
    %91 = vector.load %arg8[%c0_54, %c0_55, %c0_56] : memref<1x16x8xbf16, #tpu.memory_space<vmem>>, vector<1x16x8xbf16>
    tpu.vector_store %arg8[%c0_54, %c0_55, %c0_56], %90 {strides = array<i32>} : memref<1x16x8xbf16, #tpu.memory_space<vmem>>, vector<1x16x8xbf16>,
    return
  }
  func.func @transform_0(%arg0: i32) -> (i32, i32, i32) {
    %c0_i32 = arith.constant 0 : i32
    %c0_i32_0 = arith.constant 0 : i32
    %c0_i32_1 = arith.constant 0 : i32
    return %arg0, %c0_i32, %c0_i32_0 : i32, i32, i32
  }
  func.func @transform_1(%arg0: i32) -> (i32, i32, i32) {
    %c0_i32 = arith.constant 0 : i32
    %c0_i32_0 = arith.constant 0 : i32
    %c0_i32_1 = arith.constant 0 : i32
    %c0_i32_2 = arith.constant 0 : i32
    return %c0_i32, %c0_i32_0, %c0_i32_1 : i32, i32, i32
  }
  func.func @transform_2(%arg0: i32) -> (i32, i32, i32) {
    %c0_i32 = arith.constant 0 : i32
    %c0_i32_0 = arith.constant 0 : i32
    %c0_i32_1 = arith.constant 0 : i32
    %c0_i32_2 = arith.constant 0 : i32
    return %c0_i32, %c0_i32_0, %c0_i32_1 : i32, i32, i32
  }
  func.func @transform_3(%arg0: i32) -> (i32, i32, i32) {
    %c0_i32 = arith.constant 0 : i32
    %c0_i32_0 = arith.constant 0 : i32
    %c0_i32_1 = arith.constant 0 : i32
    %c0_i32_2 = arith.constant 0 : i32
    return %c0_i32, %c0_i32_0, %c0_i32_1 : i32, i32, i32
  }
  func.func @transform_4(%arg0: i32) -> (i32, i32, i32) {
    %c0_i32 = arith.constant 0 : i32
    %c0_i32_0 = arith.constant 0 : i32
    %c0_i32_1 = arith.constant 0 : i32
    %c0_i32_2 = arith.constant 0 : i32
    return %c0_i32, %c0_i32_0, %c0_i32_1 : i32, i32, i32
  }
  func.func @transform_5(%arg0: i32) -> (i32, i32, i32) {
    %c0_i32 = arith.constant 0 : i32
    %c0_i32_0 = arith.constant 0 : i32
    %c0_i32_1 = arith.constant 0 : i32
    %c0_i32_2 = arith.constant 0 : i32
    return %c0_i32, %c0_i32_0, %c0_i32_1 : i32, i32, i32
  }
  func.func @transform_6(%arg0: i32) -> (i32, i32, i32) {
    %c0_i32 = arith.constant 0 : i32
    %c0_i32_0 = arith.constant 0 : i32
    %c0_i32_1 = arith.constant 0 : i32
    %c0_i32_2 = arith.constant 0 : i32
    return %c0_i32, %c0_i32_0, %c0_i32_1 : i32, i32, i32
  }
  func.func @transform_7(%arg0: i32) -> (i32, i32, i32) {
    %c0_i32 = arith.constant 0 : i32
    %c0_i32_0 = arith.constant 0 : i32
    %c0_i32_1 = arith.constant 0 : i32
    return %arg0, %c0_i32, %c0_i32_0 : i32, i32, i32
  }
}

</mosaic_0001>

<bundles_post_ra>
// kernel: tpu_custom_call.1
= control target key start
LH: loop header
LB: loop body
LE: loop exit
PB: predicated region body
PF: predicated region fallthrough
CT: control target
= control target key end

     0   :  { %12 = vsyncpa [#allocation4], 0  ;;  %s2003_s0 = inlined_call_operand.vmem [shape: f32[2,16,4], index: 0, kind: input, shape index: {}]   ;;  %s2004_s1 = inlined_call_operand.hbm [shape: bf16[2,256,128], index: 1, kind: input, shape index: {}]   ;;  %s2005_s2 = inlined_call_operand.vmem [shape: f32[2,1,128], index: 2, kind: input, shape index: {}]   ;;  %s2006_s3 = inlined_call_operand.hbm [shape: bf16[2,256,128], index: 3, kind: input, shape index: {}]   ;;  %s2007_s4 = inlined_call_operand.vmem [shape: f32[2,1,128], index: 4, kind: input, shape index: {}]   ;;  %s2008_s5 = inlined_call_operand.hbm [shape: bf16[2,128,128], index: 5, kind: input, shape index: {}]   ;;  %s2009_s6 = inlined_call_operand.vmem [shape: f32[2,1,128], index: 6, kind: input, shape index: {}]   ;;  %s2010_s7 = inlined_call_operand.vmem [shape: bf16[2,16,8], index: 7, kind: output, shape index: {}]  }
   0x1   :  { %13 = vsyncpa [#allocation6], 0  ;;  %s1806_s24 = smov 0  }
   0x2 LB: > { %s1812_s25 = sadd.s32 4294967295, %s1756_s24   ;;  %p1313_p0 = scmp.ge.s32.totalorder %s1756_s24, 1  ;;  %s1756_s24 = sphi %s1806_s24, %s19_s24  }
   0x3   : > { %p202_p1 = scmp.lt.s32.totalorder %s1756_s24, 3  ;;  %p2011_p2 = scmp.eq.s32.totalorder %s1812_s25, 0 }
   0x4   : > { %s1758_s27 = smov [#allocation5]   ;;  %s1759_s29 = smov [#allocation3]  }
   0x5   : > { %p1817_p3 = pnand %p1313_p0, %p202_p1  ;;  %s230_s28 = sshll.u32 %s1758_s27, 4  ;;  %s231_s28 = int_to_ptr.vmem [resolvable:$true] %s230_s28 }
   0x6   : > { %s214_s30 = sshll.u32 %s1759_s29, 4  ;;  %s1760_s9 = smov [#allocation7]   ;;  %s1829_s30 = int_to_ptr.vmem [resolvable:$true] %s214_s30 }
   0x7   : > { %s2013_s26 = scalar_select %p1817_p3, 1, 0 }
   0x8   : > { %p1554_p4 = pneg %p1817_p3  ;;  %s246_s10 = sshll.u32 %s1760_s9, 4  ;;  %s1831_s10 = int_to_ptr.vmem [resolvable:$true] %s246_s10 }
   0x9   : > { %s1658_s13 = scalar_lea.hbm %s2006_s3, 4096 }
   0xa   : > { %p1825_p5 = pnand %p2011_p2, %p1554_p4  ;;  %p1659_p6 = scmp.ne.s32.totalorder %s2006_s3, %s1658_s13 }
   0xb   : > { %p1665_p10 = scmp.lt.u32.totalorder %s1658_s13, %s2006_s3 }
   0xc   : > { %p1841_p7 = pneg %p1825_p5 }
   0xe   : > { %p1661_p8 = pnand %p1841_p7, %p1659_p6 }
  0x10   : > { %p1662_p9 = pneg %p1661_p8 }
  0x12   : > { %p1667_p11 = pnand %p1665_p10, %p1662_p9 }
  0x14   : > { %1670 = shalt.err (!%p1667_p11)
}
  0x15   : > { %s1671_s19 = scalar_lea.vmem %s231_s28, 4096  ;;  %p1679_p1 = scmp.lt.s32.totalorder %s231_s28, %s231_s28 }
  0x16   : > { %p1672_p12 = scmp.ne.s32.totalorder %s231_s28, %s1671_s19  ;;  %p1680_p4 = scmp.lt.s32.totalorder %s1671_s19, %s1671_s19 }
  0x18   : > { %p1674_p13 = pnand %p1672_p12, %p1841_p7  ;;  %p1681_p2 = por %p1680_p4, %p1679_p1 }
  0x1a   : > { %p1675_p0 = pneg %p1674_p13 }
  0x1c   : > { %p1682_p3 = pnand %p1681_p2, %p1675_p0 }
  0x1e   : > { %1685 = shalt.err (!%p1682_p3)
}
  0x1f   : > { %s1761_s20 = smov 64   ;;  %s1762_s21 = smov 4  }
  0x20   : > { %1560 = dma.hbm_to_vmem [thread:$0]  (!%p1825_p5), %s2006_s3, 4096, %s231_s28, [#allocation6], %s1761_s20, %s1761_s20, %s1762_s21  }
  0x21   : > { %s1686_s9 = scalar_lea.hbm %s2004_s1, 4096 }
  0x22   : > { %p1687_p2 = scmp.ne.s32.totalorder %s2004_s1, %s1686_s9  ;;  %p1693_p8 = scmp.lt.u32.totalorder %s1686_s9, %s2004_s1 }
  0x24   : > { %p1689_p3 = pnand %p1687_p2, %p1841_p7 }
  0x26   : > { %p1690_p6 = pneg %p1689_p3 }
  0x28   : > { %p1695_p9 = pnand %p1693_p8, %p1690_p6 }
  0x2a   : > { %1698 = shalt.err (!%p1695_p9)
}
  0x2b   : > { %s1699_s28 = scalar_lea.vmem %s1829_s30, 4096  ;;  %p1707_p13 = scmp.lt.s32.totalorder %s1829_s30, %s1829_s30 }
  0x2c   : > { %p1700_p10 = scmp.ne.s32.totalorder %s1829_s30, %s1699_s28  ;;  %p1708_p0 = scmp.lt.s32.totalorder %s1699_s28, %s1699_s28 }
  0x2e   : > { %p1702_p11 = pnand %p1700_p10, %p1841_p7  ;;  %p1709_p1 = por %p1708_p0, %p1707_p13 }
  0x30   : > { %p1703_p12 = pneg %p1702_p11 }
  0x32   : > { %p1710_p4 = pnand %p1709_p1, %p1703_p12 }
  0x34   : > { %1713 = shalt.err (!%p1710_p4)
}
  0x35   : > { %1557 = dma.hbm_to_vmem [thread:$0]  (!%p1825_p5), %s2004_s1, 4096, %s1829_s30, [#allocation4], %s1761_s20, %s1761_s20, %s1762_s21  }
  0x36   : > { %s1714_s22 = scalar_lea.hbm %s2008_s5, 2048 }
  0x37   : > { %p1715_p2 = scmp.ne.s32.totalorder %s2008_s5, %s1714_s22  ;;  %p1721_p8 = scmp.lt.u32.totalorder %s1714_s22, %s2008_s5 }
  0x39   : > { %p1717_p3 = pnand %p1715_p2, %p1841_p7 }
  0x3b   : > { %p1718_p6 = pneg %p1717_p3 }
  0x3d   : > { %p1723_p9 = pnand %p1721_p8, %p1718_p6 }
  0x3f   : > { %1726 = shalt.err (!%p1723_p9)
}
  0x40   : > { %s1727_s30 = scalar_lea.vmem %s1831_s10, 2048  ;;  %p1735_p13 = scmp.lt.s32.totalorder %s1831_s10, %s1831_s10 }
  0x41   : > { %p1728_p10 = scmp.ne.s32.totalorder %s1831_s10, %s1727_s30  ;;  %p1736_p0 = scmp.lt.s32.totalorder %s1727_s30, %s1727_s30 }
  0x43   : > { %p1730_p11 = pnand %p1728_p10, %p1841_p7  ;;  %p1737_p1 = por %p1736_p0, %p1735_p13 }
  0x45   : > { %p1731_p12 = pneg %p1730_p11 }
  0x47   : > { %p1738_p4 = pnand %p1737_p1, %p1731_p12 }
  0x49   : > { %1741 = shalt.err (!%p1738_p4)
}
  0x4a   : > { %1563 = dma.hbm_to_vmem [thread:$0]  (!%p1825_p5), %s2008_s5, 2048, %s1831_s10, [#allocation6], %s1761_s20, %s1761_s20, %s1762_s21  }
  0x4b   : > { %p2016_p2 = scmp.ne.s32.totalorder %s2013_s26, 0 }
  0x4c   : > { %p2017_p7 = scmp.eq.s32.totalorder (!%p2016_p2), %s1812_s25, 0 }
  0x4d   : > { %273 = sbr.rel (%p2016_p2) target bundleno = 1028 (0x404), region = 48 }
  0x54   : > { %1747 = dma.done.wait (%p2017_p7), [#allocation4], 4096   ;;  %p2018_p3 = pmov %p2017_p7 }
  0x56   : > { %1749 = vsyncadd (%p2018_p3), [#allocation4], 4294963200  ;;  %p2019_p6 = pmov %p2018_p3 }
  0x57   : > { %p2020_p8 = pmov %p2018_p3 }
  0x58   : > { %1751 = dma.done.wait (%p2019_p6), [#allocation6], 6144  }
  0x59   : > { %1753 = vsyncadd (%p2020_p8), [#allocation6], 4294961152  ;;  %v1763_v0 = vmov 0.0   ;;  %v1586_v1 = vld [vmem:[#allocation3 + $0x40] sm:$0xff]   ;;  %v1588_v3 = vld [vmem:[#allocation3 + $0x48] sm:$0xff]   ;;  %p313_p5 = scmp.lt.s32.totalorder %s1812_s25, 1  ;;  %v333_v11 = vlaneseq }
  0x5a   : > { %324 = vst [vmem:[#allocation2] sm:$0xff] %v1763_v0  ;;  %325 = vst [vmem:[#allocation2 + $0x8] sm:$0xff] %v1763_v0  ;;  %v1587_v2 = vld [vmem:[#allocation3] sm:$0xff]   ;;  %1425 = vmatprep.subr.bf16.mxu0 %v1586_v1  ;;  %v1589_v4 = vld [vmem:[#allocation3 + $0x8] sm:$0xff]   ;;  %vm328_vm0 = vcmask 31744   ;;  %vm1764_vm2 = vmmov 1  }
  0x5b   : > { %1426 = vmatpush3.bf16.msra.mxu0 %v1587_v2  ;;  %v1590_v5 = vld [vmem:[#allocation3 + $0x50] sm:$0xff]   ;;  %s2026_s25 = smov (!%p313_p5, %s1812_s25), 1  ;;  %v1592_v7 = vld [vmem:[#allocation3 + $0x58] sm:$0xff]   ;;  %v1594_v9 = vld [vmem:[#allocation3 + $0x60] sm:$0xff]   ;;  %v1932_v17 = vshrl.u32 %v333_v11, 7  ;;  %vm1765_vm5 = vmmov 0  }
  0x5c   : > { %1427 = vmatprep.subr.bf16.mxu0 %v1588_v3  ;;  %v1591_v6 = vld [vmem:[#allocation3 + $0x10] sm:$0xff]   ;;  %s1421_s26 = sshll.u32 %s2026_s25, 4  ;;  %v1593_v8 = vld [vmem:[#allocation3 + $0x18] sm:$0xff]   ;;  %v1595_v10 = vld [vmem:[#allocation3 + $0x20] sm:$0xff]   ;;  %s1422_s23 = sshll.u32 %s2026_s25, 3  ;;  %vm1222_vm9 = vcmask 60416  }
  0x5d   : > { %s317_s16 = scalar_lea.vmem %s2003_s0, %s1421_s26  ;;  %v1596_v12 = vld [vmem:[#allocation3 + $0x68] sm:$0xff]   ;;  %v1602_v16 = vld [vmem:[#allocation5 + $0x40] sm:$0xff]   ;;  %v1598_v19 = vld [vmem:[#allocation3 + $0x70] sm:$0xff]   ;;  %vm336_vm1 = vcmp.ge.s32.totalorder %v1932_v17, 1  ;;  %vm343_vm4 = vcmp.lt.s32.totalorder %v1932_v17, 1  ;;  %vm338_vm6 = vcmp.ge.s32.totalorder %v1932_v17, 2  ;;  %s322_s9 = scalar_lea.vmem %s2010_s7, %s1422_s23 }
  0x5e   : > { %v326_v13 = vld [vmem:[%s317_s16] sm:$0xff]  ;;  %v327_v14 = vld [vmem:[%s317_s16 + $0x8] sm:$0xff]  ;;  %v1597_v15 = vld [vmem:[#allocation3 + $0x28] sm:$0xff]   ;;  %1447 = vmatprep.subr.bf16.mxu1 %v1602_v16  ;;  %vm834_vm7 = vcmp.lt.s32.totalorder %v1932_v17, 2 }
  0x5f   : > { %1428 = vmatpush3.bf16.msra.mxu0 %v1589_v4  ;;  %329 = vst.msk [vmem:[#allocation2] sm:$0xff] %vm328_vm0, %v326_v13  ;;  %330 = vst.msk [vmem:[#allocation2 + $0x8] sm:$0xff] %vm328_vm0, %v327_v14  ;;  %v1603_v18 = vld [vmem:[#allocation5] sm:$0xff]   ;;  %v1605_v20 = vld [vmem:[#allocation5 + $0x48] sm:$0xff]  }
  0x60   : > { %1429 = vmatprep.subr.bf16.mxu0 %v1590_v5  ;;  %1448 = vmatpush3.bf16.msra.mxu1 %v1603_v18  ;;  %v1599_v21 = vld [vmem:[#allocation3 + $0x30] sm:$0xff]   ;;  %v1606_v22 = vld [vmem:[#allocation5 + $0x8] sm:$0xff]   ;;  %v1600_v23 = vld [vmem:[#allocation3 + $0x78] sm:$0xff]  }
  0x61   : > { %1449 = vmatprep.subr.bf16.mxu1 %v1605_v20  ;;  %vm1936_vm3 = vmpackc.low %vm1764_vm2, %vm336_vm1  ;;  %v1608_v25 = vld [vmem:[#allocation5 + $0x50] sm:$0xff]   ;;  %v1601_v28 = vld [vmem:[#allocation3 + $0x38] sm:$0xff]  }
  0x62   : > { %v1609_v32 = vld [vmem:[#allocation5 + $0x10] sm:$0xff]   ;;  %v1611_v35 = vld [vmem:[#allocation5 + $0x58] sm:$0xff]   ;;  %v1604_v37 = vld [vmem:[#allocation7] sm:$0xff]  }
  0x63   : > { %1430 = vmatpush3.bf16.msra.mxu0 %v1591_v6  ;;  %v1612_v36 = vld [vmem:[#allocation5 + $0x18] sm:$0xff]   ;;  %v1614_v39 = vld [vmem:[#allocation5 + $0x60] sm:$0xff]   ;;  %v1607_v40 = vld [vmem:[#allocation7 + $0x8] sm:$0xff]  }
  0x64   : > { %1431 = vmatprep.subr.bf16.mxu0 %v1592_v7  ;;  %1450 = vmatpush3.bf16.msra.mxu1 %v1606_v22  ;;  %v1610_v41 = vld [vmem:[#allocation7 + $0x10] sm:$0xff]   ;;  %v1613_v42 = vld [vmem:[#allocation7 + $0x18] sm:$0xff]   ;;  %v1615_v43 = vld [vmem:[#allocation5 + $0x20] sm:$0xff]  }
  0x65   : > { %1451 = vmatprep.subr.bf16.mxu1 %v1608_v25  ;;  %v1616_v44 = vld [vmem:[#allocation7 + $0x20] sm:$0xff]   ;;  %v1617_v45 = vld [vmem:[#allocation5 + $0x68] sm:$0xff]   ;;  %v1620_v48 = vld [vmem:[#allocation5 + $0x70] sm:$0xff]  }
  0x66   : > { %v331_v26 = vld [vmem:[#allocation2] sm:$0xff]  ;;  %v332_v27 = vld [vmem:[#allocation2 + $0x8] sm:$0xff]  ;;  %v1618_v46 = vld [vmem:[#allocation5 + $0x28] sm:$0xff]  }
  0x67   : > { %1432 = vmatpush3.bf16.msra.mxu0 %v1593_v8  ;;  %v340_v29 = vpack.c.bf16 %v332_v27, %v331_v26  ;;  %v341_v30 = vrot.slane %v331_v26, 7  ;;  %v342_v31 = vrot.slane %v332_v27, 7  ;;  %v1619_v47 = vld [vmem:[#allocation7 + $0x28] sm:$0xff]   ;;  %v1621_v49 = vld [vmem:[#allocation5 + $0x30] sm:$0xff]   ;;  %v1623_v51 = vld [vmem:[#allocation5 + $0x78] sm:$0xff]  }
  0x68   : > { %1433 = vmatprep.subr.bf16.mxu0 %v1594_v9  ;;  %1452 = vmatpush3.bf16.msra.mxu1 %v1609_v32  ;;  %v1622_v50 = vld [vmem:[#allocation7 + $0x30] sm:$0xff]   ;;  %v1624_v52 = vld [vmem:[#allocation5 + $0x38] sm:$0xff]   ;;  %v1626_v54 = vld [vmem:[#allocation3 + $0xc0] sm:$0xff]  }
  0x69   : > { %v344_v33 = vsel %vm343_vm4, %v341_v30, %v342_v31  ;;  %v345_v34 = vsel %vm343_vm4, %v342_v31, %v341_v30  ;;  %520 = vmatprep.mubr.bf16.mxu0 %v340_v29  ;;  %1453 = vmatprep.subr.bf16.mxu1 %v1611_v35  ;;  %v1625_v53 = vld [vmem:[#allocation7 + $0x38] sm:$0xff]   ;;  %v1326_v57 = vld [vmem:[%s2005_s2] ss:$0 sm:$0xff]  ;;  %v1627_v7 = vld [vmem:[#allocation3 + $0x80] sm:$0xff]  }
  0x6a   : > { %v1344_v38 = vpack.c.bf16 %v344_v33, %v345_v34  ;;  %v1628_v9 = vld [vmem:[#allocation3 + $0xc8] sm:$0xff]   ;;  %v1630_v11 = vld [vmem:[#allocation3 + $0xd0] sm:$0xff]   ;;  %v1632_v13 = vld [vmem:[#allocation3 + $0xd8] sm:$0xff]  }
  0x6b   : > { %1434 = vmatpush3.bf16.msra.mxu0 %v1595_v10  ;;  %v1629_v10 = vld [vmem:[#allocation3 + $0x88] sm:$0xff]   ;;  %v1633_v14 = vld [vmem:[#allocation3 + $0x98] sm:$0xff]   ;;  %v1635_v18 = vld [vmem:[#allocation3 + $0xa0] sm:$0xff]  }
  0x6c   : > { %1435 = vmatprep.subr.bf16.mxu0 %v1596_v12  ;;  %1454 = vmatpush3.bf16.msra.mxu1 %v1612_v36  ;;  %v1631_v12 = vld [vmem:[#allocation3 + $0x90] sm:$0xff]   ;;  %v1636_v22 = vld [vmem:[#allocation3 + $0xe8] sm:$0xff]   ;;  %v1640_v26 = vld [vmem:[#allocation3 + $0xf8] sm:$0xff]  }
  0x6d   : > { %1455 = vmatprep.subr.bf16.mxu1 %v1614_v39  ;;  %v1638_v24 = vld [vmem:[#allocation3 + $0xf0] sm:$0xff]   ;;  %v1641_v27 = vld [vmem:[#allocation3 + $0xb8] sm:$0xff]   ;;  %v1644_v30 = vld [vmem:[#allocation5 + $0xc8] sm:$0xff]  }
  0x6e   : > { %v1639_v25 = vld [vmem:[#allocation3 + $0xb0] sm:$0xff]   ;;  %v1645_v31 = vld [vmem:[#allocation5 + $0x88] sm:$0xff]   ;;  %v1648_v34 = vld [vmem:[#allocation5 + $0xd8] sm:$0xff]  }
  0x6f   : > { %1436 = vmatpush3.bf16.msra.mxu0 %v1597_v15  ;;  %v1634_v15 = vld [vmem:[#allocation3 + $0xe0] sm:$0xff]   ;;  %v1646_v32 = vld [vmem:[#allocation5 + $0xd0] sm:$0xff]   ;;  %v1649_v35 = vld [vmem:[#allocation5 + $0x98] sm:$0xff]  }
  0x70   : > { %1437 = vmatprep.subr.bf16.mxu0 %v1598_v19  ;;  %1456 = vmatpush3.bf16.msra.mxu1 %v1615_v43  ;;  %v1647_v33 = vld [vmem:[#allocation5 + $0x90] sm:$0xff]   ;;  %v1650_v36 = vld [vmem:[#allocation5 + $0xe0] sm:$0xff]   ;;  %vm1974_vm8 = vmpackc.low %vm1764_vm2, %vm338_vm6 }
  0x71   : > { %1457 = vmatprep.subr.bf16.mxu1 %v1617_v45  ;;  %v1346_v39 = vld [vmem:[%s2007_s4] ss:$0 sm:$0xff] }
  0x73   : > { %1438 = vmatpush3.bf16.msra.mxu0 %v1599_v21 }
  0x74   : > { %1439 = vmatprep.subr.bf16.mxu0 %v1600_v23  ;;  %1458 = vmatpush3.bf16.msra.mxu1 %v1618_v46  ;;  %v1637_v23 = vld [vmem:[#allocation3 + $0xa8] sm:$0xff]  }
  0x75   : > { %1459 = vmatprep.subr.bf16.mxu1 %v1620_v48 }
  0x77   : > { %1440 = vmatpush3.bf16.msra.mxu0 %v1601_v28  ;;  %v1642_v28 = vld [vmem:[#allocation5 + $0xc0] sm:$0xff]  }
  0x78   : > { %1522 = vmatprep.subr.bf16.mxu0 %v1763_v0  ;;  %1460 = vmatpush3.bf16.msra.mxu1 %v1621_v49 }
  0x79   : > { %1461 = vmatprep.subr.bf16.mxu1 %v1623_v51 }
  0x7a   : > { %1345 = vmatmul.mubr.msk.bf16.vlgmr.msra.gmra.mrb[0].mxu0 %vm1936_vm3, %v1344_v38 }
  0x7b   : > { %1523 = vmatpush3.bf16.msra.mxu0 %v1604_v37  ;;  %1538 = vmatprep.mubr.msk.bf16.mxu0 %vm1765_vm5, %v1763_v0  ;;  %v1366_v37 = vld [vmem:[%s2009_s6] ss:$0 sm:$0xff] }
  0x7c   : > { %1524 = vmatprep.subr.bf16.mxu0 %v1763_v0  ;;  %1462 = vmatpush3.bf16.msra.mxu1 %v1624_v52 }
  0x7d   : > { %1478 = vmatprep.subr.bf16.mxu1 %v1626_v54 }
  0x7f   : > { %1525 = vmatpush3.bf16.msra.mxu0 %v1607_v40 }
  0x80   : > { %1526 = vmatprep.subr.bf16.mxu0 %v1763_v0 }
  0x83   : > { %1527 = vmatpush3.bf16.msra.mxu0 %v1610_v41 }
  0x84   : > { %1528 = vmatprep.subr.bf16.mxu0 %v1763_v0 }
  0x87   : > { %1529 = vmatpush3.bf16.msra.mxu0 %v1613_v42 }
  0x88   : > { %1530 = vmatprep.subr.bf16.mxu0 %v1763_v0 }
  0x8b   : > { %1531 = vmatpush3.bf16.msra.mxu0 %v1616_v44 }
  0x8c   : > { %1532 = vmatprep.subr.bf16.mxu0 %v1763_v0 }
  0x8f   : > { %1533 = vmatpush3.bf16.msra.mxu0 %v1619_v47 }
  0x90   : > { %1534 = vmatprep.subr.bf16.mxu0 %v1763_v0 }
  0x93   : > { %1535 = vmatpush3.bf16.msra.mxu0 %v1622_v50 }
  0x94   : > { %1536 = vmatprep.subr.bf16.mxu0 %v1763_v0 }
  0x97   : > { %1537 = vmatpush3.bf16.msra.mxu0 %v1625_v53 }
  0x98   : > { %1500 = vmatprep.subr.bf16.mxu0 %v1642_v28 }
  0x9a   : > { %1539 = vmatmul.mubr.bf16.vlgmr.msra.gmra.mrb[4].mxu0 %v340_v29  ;;  %v1643_v29 = vld [vmem:[#allocation5 + $0x80] sm:$0xff]  }
  0x9b   : > { %1501 = vmatpush3.bf16.msra.mxu0 %v1643_v29 }
  0x9c   : > { %1502 = vmatprep.subr.bf16.mxu0 %v1644_v30 }
  0x9f   : > { %1503 = vmatpush3.bf16.msra.mxu0 %v1645_v31 }
  0xa0   : > { %1504 = vmatprep.subr.bf16.mxu0 %v1646_v32 }
  0xa3   : > { %1505 = vmatpush3.bf16.msra.mxu0 %v1647_v33 }
  0xa4   : > { %1506 = vmatprep.subr.bf16.mxu0 %v1648_v34 }
  0xa7   : > { %1507 = vmatpush3.bf16.msra.mxu0 %v1649_v35 }
  0xa8   : > { %1508 = vmatprep.subr.bf16.mxu0 %v1650_v36 }
 0x14d   : > { %v1441_v55 = vpop.f32.mrb[0].mxu0 }
 0x14e   : > { %v1442_v56 = vpop.f32.mrb[1].mxu0 }
 0x14f   : > { %v1443_v58 = vadd.f32 %v1442_v56, %v1441_v55  ;;  %v1444_v59 = vpop.f32.mrb[2].mxu0 }
 0x150   : > { %v1445_v60 = vpop.f32.mrb[3].mxu0 }
 0x151   : > { %v1446_v61 = vadd.f32 %v1445_v60, %v1444_v59  ;;  %v523_v62 = vadd.f32 %v1443_v58, %v1326_v57  ;;  %v1651_v60 = vld [vmem:[#allocation5 + $0xa0] sm:$0xff]  }
 0x152   : > { %1509 = vmatpush3.bf16.msra.mxu0 %v1651_v60 }
 0x153   : > { %v526_v63 = vadd.f32 %v1446_v61, %v1326_v57  ;;  %v529_v1 = vmax.f32 %v523_v62, 0.0  ;;  %v1652_v61 = vld [vmem:[#allocation5 + $0xe8] sm:$0xff]  }
 0x154   : > { %v1653_v62 = vld [vmem:[#allocation5 + $0xa8] sm:$0xff]   ;;  %1510 = vmatprep.subr.bf16.mxu0 %v1652_v61 }
 0x155   : > { %v530_v2 = vmax.f32 %v526_v63, 0.0  ;;  %v532_v4 = vrot.slane %v529_v1, 7  ;;  %v1654_v63 = vld [vmem:[#allocation5 + $0xf0] sm:$0xff]  }
 0x156   : > { %1511 = vmatpush3.bf16.msra.mxu0 %v1653_v62 }
 0x157   : > { %v531_v3 = vpack.c.bf16 %v530_v2, %v529_v1  ;;  %v533_v0 = vrot.slane %v530_v2, 7  ;;  %v1655_v1 = vld [vmem:[#allocation5 + $0xb0] sm:$0xff]   ;;  %1512 = vmatprep.subr.bf16.mxu0 %v1654_v63  ;;  %v1656_v2 = vld [vmem:[#allocation5 + $0xf8] sm:$0xff]  }
 0x159   : > { %706 = vmatprep.mubr.bf16.mxu1 %v531_v3  ;;  %v534_v5 = vsel %vm343_vm4, %v532_v4, %v533_v0  ;;  %v535_v6 = vsel %vm343_vm4, %v533_v0, %v532_v4  ;;  %v1657_v3 = vld [vmem:[#allocation5 + $0xb8] sm:$0xff]   ;;  %v1376_v0 = vld [vmem:[%s2005_s2 + $0x1] ss:$0 sm:$0xff] }
 0x15a   : > { %v1364_v8 = vpack.c.bf16 %v534_v5, %v535_v6  ;;  %1513 = vmatpush3.bf16.msra.mxu0 %v1655_v1 }
 0x15b   : > { %1514 = vmatprep.subr.bf16.mxu0 %v1656_v2 }
 0x15c   : > { %1365 = vmatmul.mubr.msk.bf16.vlgmr.msra.gmra.mrb[0].mxu1 %vm1936_vm3, %v1364_v8 }
 0x15d   : > { %1479 = vmatpush3.bf16.msra.mxu1 %v1627_v7 }
 0x15e   : > { %1480 = vmatprep.subr.bf16.mxu1 %v1628_v9  ;;  %1515 = vmatpush3.bf16.msra.mxu0 %v1657_v3 }
 0x161   : > { %1481 = vmatpush3.bf16.msra.mxu1 %v1629_v10 }
 0x162   : > { %1482 = vmatprep.subr.bf16.mxu1 %v1630_v11 }
 0x165   : > { %1483 = vmatpush3.bf16.msra.mxu1 %v1631_v12 }
 0x166   : > { %1484 = vmatprep.subr.bf16.mxu1 %v1632_v13 }
 0x169   : > { %1485 = vmatpush3.bf16.msra.mxu1 %v1633_v14 }
 0x16a   : > { %1486 = vmatprep.subr.bf16.mxu1 %v1634_v15 }
 0x16d   : > { %v820_v16 = vpop.f32.mrb[4].mxu0  ;;  %1487 = vmatpush3.bf16.msra.mxu1 %v1635_v18 }
 0x16e   : > { %v1540_v19 = vpop.f32.mrb[5].mxu0  ;;  %1488 = vmatprep.subr.bf16.mxu1 %v1636_v22  ;;  %v821_v41 = vadd.f32 %v1366_v37, %v820_v16  ;;  %v1397_v22 = vld [vmem:[%s2007_s4 + $0x1] ss:$0 sm:$0xff] }
 0x16f   : > { %v823_v20 = vpop.f32.mrb[6].mxu0 }
 0x170   : > { %v1541_v21 = vpop.f32.mrb[7].mxu0  ;;  %v824_v48 = vadd.f32 %v1366_v37, %v823_v20 }
 0x171   : > { %1489 = vmatpush3.bf16.msra.mxu1 %v1637_v23 }
 0x172   : > { %1490 = vmatprep.subr.bf16.mxu1 %v1638_v24 }
 0x175   : > { %1491 = vmatpush3.bf16.msra.mxu1 %v1639_v25 }
 0x176   : > { %1492 = vmatprep.subr.bf16.mxu1 %v1640_v26 }
 0x179   : > { %1493 = vmatpush3.bf16.msra.mxu1 %v1641_v27 }
 0x22f   : > { %v1463_v38 = vpop.f32.mrb[0].mxu1 }
 0x230   : > { %v1464_v40 = vpop.f32.mrb[1].mxu1 }
 0x231   : > { %v1465_v42 = vadd.f32 %v1464_v40, %v1463_v38  ;;  %v1466_v43 = vpop.f32.mrb[2].mxu1 }
 0x232   : > { %v1467_v44 = vpop.f32.mrb[3].mxu1 }
 0x233   : > { %v709_v45 = vadd.f32 %v1465_v42, %v1346_v39  ;;  %v1468_v46 = vadd.f32 %v1467_v44, %v1466_v43 }
 0x235   : > { %v827_v47 = vadd.f32 %v821_v41, %v709_v45  ;;  %v712_v49 = vadd.f32 %v1468_v46, %v1346_v39 }
 0x237   : > { %v829_v50 = vmax.f32 %v827_v47, 0.0  ;;  %v828_v51 = vadd.f32 %v824_v48, %v712_v49 }
 0x239   : > { %v830_v52 = vmax.f32 %v828_v51, 0.0  ;;  %v832_v53 = vrot.slane %v829_v50, 6 }
 0x23b   : > { %v833_v54 = vrot.slane %v830_v52, 6  ;;  %v831_v55 = vpack.c.bf16 %v830_v52, %v829_v50 }
 0x23d   : > { %1013 = vmatprep.mubr.bf16.mxu1 %v831_v55  ;;  %v835_v57 = vsel %vm834_vm7, %v832_v53, %v833_v54  ;;  %v836_v58 = vsel %vm834_vm7, %v833_v54, %v832_v53 }
 0x23e   : > { %v1394_v59 = vpack.c.bf16 %v835_v57, %v836_v58 }
 0x240   : > { %1395 = vmatmul.mubr.msk.bf16.vlgmr.msra.gmra.mrb[4].mxu1 %vm1974_vm8, %v1394_v59 }
 0x313   : > { %v1494_v4 = vpop.f32.mrb[4].mxu1 }
 0x314   : > { %v1495_v5 = vpop.f32.mrb[5].mxu1 }
 0x315   : > { %v1496_v6 = vadd.f32 %v1495_v5, %v1494_v4  ;;  %v1497_v7 = vpop.f32.mrb[6].mxu1 }
 0x316   : > { %v1498_v8 = vpop.f32.mrb[7].mxu1 }
 0x317   : > { %v1016_v9 = vadd.f32 %v1496_v6, %v1376_v0  ;;  %v1499_v10 = vadd.f32 %v1498_v8, %v1497_v7 }
 0x319   : > { %v1022_v11 = vmax.f32 %v1016_v9, 0.0  ;;  %v1019_v12 = vadd.f32 %v1499_v10, %v1376_v0 }
 0x31b   : > { %v1023_v13 = vmax.f32 %v1019_v12, 0.0  ;;  %v1025_v14 = vrot.slane %v1022_v11, 6 }
 0x31d   : > { %v1026_v15 = vrot.slane %v1023_v13, 6  ;;  %v1024_v16 = vpack.c.bf16 %v1023_v13, %v1022_v11 }
 0x31f   : > { %v1027_v18 = vsel %vm834_vm7, %v1025_v14, %v1026_v15  ;;  %v1028_v19 = vsel %vm834_vm7, %v1026_v15, %v1025_v14  ;;  %1201 = vmatprep.mubr.bf16.mxu0 %v1024_v16 }
 0x320   : > { %v1415_v20 = vpack.c.bf16 %v1027_v18, %v1028_v19 }
 0x322   : > { %1416 = vmatmul.mubr.msk.bf16.vlgmr.msra.gmra.mrb[8].mxu0 %vm1974_vm8, %v1415_v20 }
 0x3f5   : > { %v1516_v21 = vpop.f32.mrb[8].mxu0 }
 0x3f6   : > { %v1517_v23 = vpop.f32.mrb[9].mxu0 }
 0x3f7   : > { %v1518_v24 = vadd.f32 %v1517_v23, %v1516_v21  ;;  %v1519_v25 = vpop.f32.mrb[10].mxu0 }
 0x3f8   : > { %v1520_v26 = vpop.f32.mrb[11].mxu0 }
 0x3f9   : > { %v1204_v27 = vadd.f32 %v1518_v24, %v1397_v22  ;;  %v1521_v28 = vadd.f32 %v1520_v26, %v1519_v25 }
 0x3fb   : > { %v1210_v29 = vadd.f32 %v1204_v27, %v829_v50  ;;  %v1207_v17 = vadd.f32 %v1521_v28, %v1397_v22 }
 0x3fd   : > { %v1212_v30 = vmax.f32 %v1210_v29, 0.0  ;;  %v1211_v31 = vadd.f32 %v1207_v17, %v830_v52 }
 0x3ff   : > { %v1423_v32 = vpack.c.bf16 %v1212_v30, %v1212_v30  ;;  %v1213_v33 = vmax.f32 %v1211_v31, 0.0 }
 0x401   : > { %1223 = vst.msk [vmem:[%s322_s9] sm:$0xf] %vm1222_vm9, %v1423_v32  ;;  %v1424_v34 = vpack.c.bf16 %v1213_v33, %v1213_v33 }
 0x403   : > { %1224 = vst.msk [vmem:[%s322_s9 + $0x4] sm:$0xf] %vm1222_vm9, %v1424_v34 }
 0x404 PF: > { %s19_s24 = sadd.s32 1, %s1756_s24  }
 0x405   : > { %p16_p9 = scmp.ge.s32.totalorder %s19_s24, 4  }
 0x407   :  { %18 = sbr.rel (!%p16_p9) target bundleno = 2 (0x2), region = 95 }
 0x40e   :  { %1246 = vsyncpa [#allocation4], 1 }
 0x40f   :  { %1248 = vsyncpa [#allocation4 + $0x1], 1 }
 0x410   :  { %1249 = vsyncpa [#allocation6], 1 }

</bundles_post_ra>
